<compile_context>
chip_gen: v6e
topology: v6e:2x2x1
jax: 0.10.0
libtpu: 0.0.40
codegen_flags: <defaults>
</compile_context>

<pallas_src>
import math
import numpy as np
import jax
import jax.numpy as jnp
from jax.experimental import pallas as pl
from jax.experimental.pallas import tpu as pltpu

HIDDEN = 32
RPE_DIM = 12
N_TGT_KNN = 4
MAX_ROW_TILE = 1024   # rows per grid step; ~3 MiB/step with flattened layouts (v7x-safe)
SLAB = 128            # lane-dense per-token f32 slab width for the TF kernel


# ----------------------------------------------------------------------------
# spec / padding helpers
# ----------------------------------------------------------------------------
def _rep_spec(shape):
    """Full-array block replicated across the row grid (small weights / biases)."""
    nd = len(shape)
    return pl.BlockSpec(shape, lambda i, _nd=nd: (0,) * _nd)


def _row_spec(block_shape):
    """Row-tiled block: the single grid axis walks the leading (token) dimension."""
    nd = len(block_shape)
    return pl.BlockSpec(block_shape, lambda i, _nd=nd: (i,) + (0,) * (_nd - 1))


def _round_up(x, m):
    return ((x + m - 1) // m) * m


def _tiling(n_rows):
    """(tile, padded_rows). Single full-array block when it fits (no padded copy);
    otherwise MAX_ROW_TILE tiles with only the tail tile padded."""
    n_rows = max(n_rows, 1)
    if n_rows <= MAX_ROW_TILE:
        return n_rows, n_rows
    return MAX_ROW_TILE, _round_up(n_rows, MAX_ROW_TILE)


def _pad_rows(a, n_pad):
    n = a.shape[0]
    if n == n_pad:
        return a
    return jnp.concatenate([a, jnp.zeros((n_pad - n,) + a.shape[1:], a.dtype)], axis=0)


# "parallel" lets the row grid shard across TensorCores on v7x when it has >= 2 steps.
# TODO(synk): for very small row counts the grid collapses to 1 step (one TC on v7x).
_PARALLEL = pltpu.CompilerParams(dimension_semantics=("parallel",))


# ----------------------------------------------------------------------------
# parameter init
# ----------------------------------------------------------------------------
def _dense(key, din, dout):
    return (jax.random.normal(key, (din, dout), jnp.float32) / np.sqrt(din)).astype(jnp.float32)


def init_mlp(key, din, h):
    k1, k2 = jax.random.split(key)
    return {
        "w1": _dense(k1, din, h), "b1": jnp.zeros((1, h), jnp.float32),
        "w2": _dense(k2, h, h), "b2": jnp.zeros((1, h), jnp.float32),
    }


def init_tf(key, h, r):
    ks = jax.random.split(key, 7)
    return {
        "wq": _dense(ks[0], h, h), "wk": _dense(ks[1], h, h),
        "wv": _dense(ks[2], h, h), "wo": _dense(ks[3], h, h),
        "wrpe": _dense(ks[4], r, 1),
        "ln1g": jnp.ones((1, h), jnp.float32), "ln1b": jnp.zeros((1, h), jnp.float32),
        "wf1": _dense(ks[5], h, 4 * h), "bf1": jnp.zeros((1, 4 * h), jnp.float32),
        "wf2": _dense(ks[6], 4 * h, h), "bf2": jnp.zeros((1, h), jnp.float32),
        "ln2g": jnp.ones((1, h), jnp.float32), "ln2b": jnp.zeros((1, h), jnp.float32),
    }


def _fused_qkv_weight(p_tf):
    # project-then-gather == gather-then-project for k/v (no k/v bias in this config)
    return jnp.concatenate([p_tf["wq"], p_tf["wk"], p_tf["wv"]], axis=1)    # [H, 3H]


# ----------------------------------------------------------------------------
# Pallas kernel 1: 2-layer MLP (ReLU, validity mask) fused with the q/k/v projection
# of the first TransformerBlock layer. bf16 MXU operands, f32 accumulation.
# ----------------------------------------------------------------------------
def _mlp2_qkv_kernel(xv_ref, w1_ref, b12_ref, w2_ref, wqkv_ref, embq_ref, kv_ref):
    din = w1_ref.shape[0]
    xv = xv_ref[...]                                             # [T, Din+1] f32
    x = xv[:, :din].astype(jnp.bfloat16)
    val = xv[:, din:din + 1]                                     # 1.0 = valid row
    b1 = b12_ref[0:1, :]
    b2 = b12_ref[1:2, :]
    h = jnp.dot(x, w1_ref[...], preferred_element_type=jnp.float32) + b1
    h = jnp.maximum(h, 0.0)
    h = jnp.dot(h.astype(jnp.bfloat16), w2_ref[...],
                preferred_element_type=jnp.float32) + b2
    h = jnp.maximum(h, 0.0)
    h = h * val                                                  # zero invalid rows
    qkv = jnp.dot(h.astype(jnp.bfloat16), wqkv_ref[...],
                  preferred_element_type=jnp.float32)            # [T, 3H] wide MXU op
    embq_ref[...] = jnp.concatenate([h, qkv[:, :HIDDEN]], axis=-1)   # [emb | q] f32
    kv_ref[...] = qkv[:, HIDDEN:].astype(jnp.bfloat16)               # [k | v] bf16


def mlp2_qkv(attr, valid, p_mlp, wqkv):
    """attr: [S,T,Din], valid: [S,T] bool -> (embq [S,T,2H] f32, kv [S,T,2H] bf16)."""
    S, T, Din = attr.shape
    N = S * T
    tile, n_pad = _tiling(N)
    # validity packed as the last attr column -> one lane-dense input stream
    xv = jnp.concatenate([attr.astype(jnp.float32),
                          valid.astype(jnp.float32)[..., None]], axis=-1)
    xv = _pad_rows(xv.reshape(N, Din + 1), n_pad)
    b12 = jnp.concatenate([p_mlp["b1"], p_mlp["b2"]], axis=0)    # [2, H]
    args = (xv, p_mlp["w1"].astype(jnp.bfloat16), b12,
            p_mlp["w2"].astype(jnp.bfloat16), wqkv.astype(jnp.bfloat16))
    embq, kv = pl.pallas_call(
        _mlp2_qkv_kernel,
        out_shape=(jax.ShapeDtypeStruct((n_pad, 2 * HIDDEN), jnp.float32),
                   jax.ShapeDtypeStruct((n_pad, 2 * HIDDEN), jnp.bfloat16)),
        grid=(n_pad // tile,),
        in_specs=[_row_spec((tile, Din + 1))] + [_rep_spec(a.shape) for a in args[1:]],
        out_specs=(_row_spec((tile, 2 * HIDDEN)), _row_spec((tile, 2 * HIDDEN))),
        compiler_params=_PARALLEL,
    )(*args)
    return embq[:N].reshape(S, T, 2 * HIDDEN), kv[:N].reshape(S, T, 2 * HIDDEN)


# ----------------------------------------------------------------------------
# Pallas kernel 2: q/k/v projection for TransformerBlock layers > 0
# ----------------------------------------------------------------------------
def _qkv_proj_kernel(emb_ref, wqkv_ref, embq_ref, kv_ref):
    emb = emb_ref[...]
    qkv = jnp.dot(emb.astype(jnp.bfloat16), wqkv_ref[...],
                  preferred_element_type=jnp.float32)
    embq_ref[...] = jnp.concatenate([emb, qkv[:, :HIDDEN]], axis=-1)
    kv_ref[...] = qkv[:, HIDDEN:].astype(jnp.bfloat16)


def qkv_proj(emb, wqkv):
    S, T, H = emb.shape
    N = S * T
    tile, n_pad = _tiling(N)
    x = _pad_rows(emb.reshape(N, H).astype(jnp.float32), n_pad)
    embq, kv = pl.pallas_call(
        _qkv_proj_kernel,
        out_shape=(jax.ShapeDtypeStruct((n_pad, 2 * H), jnp.float32),
                   jax.ShapeDtypeStruct((n_pad, 2 * H), jnp.bfloat16)),
        grid=(n_pad // tile,),
        in_specs=[_row_spec((tile, H)), _rep_spec((H, 3 * H))],
        out_specs=(_row_spec((tile, 2 * H)), _row_spec((tile, 2 * H))),
        compiler_params=_PARALLEL,
    )(x, wqkv.astype(jnp.bfloat16))
    return embq[:N].reshape(S, T, 2 * H), kv[:N].reshape(S, T, 2 * H)


# ----------------------------------------------------------------------------
# Pallas kernel 3: TransformerBlock with k-NN cross attention.
# q/k/v arrive pre-projected; the RPE bias (with the -1e9 invalid mask folded in)
# arrives pre-computed inside the per-token slab. K=4 is unrolled; attention math
# runs on VPU/XLU; real matmuls (out proj, FFN) run on the MXU in bf16.
# ----------------------------------------------------------------------------
def _layernorm(x, g, b):
    mu = jnp.mean(x, axis=-1, keepdims=True)
    var = jnp.mean((x - mu) ** 2, axis=-1, keepdims=True)
    return (x - mu) * jax.lax.rsqrt(var + 1e-5) * g + b


def _tf_block_kernel(slab_ref, kvg_ref, wo_ref, wf1_ref, wf2_ref, wvec_ref, o_ref):
    H = HIDDEN
    K = N_TGT_KNN
    slab = slab_ref[...]                              # [T, 128] f32, lane-dense
    src = slab[:, 0:H]                                # residual input
    q = slab[:, H:2 * H]                              # pre-projected query
    sval = slab[:, 2 * H + K:2 * H + K + 1]           # 1.0 = valid source row

    kvg = kvg_ref[...]                                # [T, K*2H] bf16, invalid k/v zeroed

    # packed small f32 params: row0 = bf1(128); row1 = ln1g|ln1b|ln2g|ln2b; row2 = bf2|0
    wvec = wvec_ref[...]
    bf1 = wvec[0:1, :]
    ln1g = wvec[1:2, 0:H]
    ln1b = wvec[1:2, H:2 * H]
    ln2g = wvec[1:2, 2 * H:3 * H]
    ln2b = wvec[1:2, 3 * H:4 * H]
    bf2 = wvec[2:3, 0:H]

    # single attention head  # TODO(synk): multi-head split omitted (synthetic single-head)
    scale = 1.0 / math.sqrt(H)
    logits, vals = [], []
    for j in range(K):                                # static unroll, K = 4
        kj = kvg[:, j * 2 * H:j * 2 * H + H].astype(jnp.float32)
        vj = kvg[:, j * 2 * H + H:(j + 1) * 2 * H].astype(jnp.float32)
        bj = slab[:, 2 * H + j:2 * H + j + 1]         # rpe bias + (-1e9)*invalid, [T,1]
        logits.append(jnp.sum(q * kj, axis=-1, keepdims=True) * scale + bj)
        vals.append(vj)
    m = logits[0]
    for j in range(1, K):
        m = jnp.maximum(m, logits[j])
    ps = [jnp.exp(l - m) for l in logits]
    denom = ps[0]
    for j in range(1, K):
        denom = denom + ps[j]
    inv = pl.reciprocal(denom, approx=True)           # EUP slot
    ctx = ps[0] * vals[0]
    for j in range(1, K):
        ctx = ctx + ps[j] * vals[j]
    ctx = ctx * inv
    ctx = jnp.dot(ctx.astype(jnp.bfloat16), wo_ref[...],
                  preferred_element_type=jnp.float32)

    x = _layernorm(src + ctx, ln1g, ln1b)
    ff = jnp.maximum(jnp.dot(x.astype(jnp.bfloat16), wf1_ref[...],
                             preferred_element_type=jnp.float32) + bf1, 0.0)
    ff = jnp.dot(ff.astype(jnp.bfloat16), wf2_ref[...],
                 preferred_element_type=jnp.float32) + bf2
    x = _layernorm(x + ff, ln2g, ln2b)

    # TODO(synk): output stays 32 lanes (<128) -> masked stores; lane-packing 4 tokens
    # per vreg row (block-diagonal weights) is left out.
    o_ref[...] = x * sval


def tf_block(embq, kv, invalid, idx_knn, invalid_knn, rpe_enc, p):
    """embq [S,n,2H] f32 (emb|q); kv [S,n,2H] bf16; invalid [S,n]; idx/invalid_knn [S,n,K];
    rpe_enc [S,n,K,RPE_DIM]."""
    S, n, _ = embq.shape
    K = idx_knn.shape[-1]
    H = HIDDEN

    tval = (~invalid_knn).astype(jnp.float32)                              # [S,n,K]
    # O(n*K) per-scene row gather of pre-projected k/v; zero invalid neighbors so their
    # v cannot leak into ctx (the -1e9 bias alone yields a uniform softmax when every
    # neighbor of a token is invalid). Flatten to a lane-dense [S,n,K*2H] slab.
    kv_g = jax.vmap(lambda e, i: e[i])(kv, idx_knn)                        # [S,n,K,2H] bf16
    kv_g = (kv_g * tval[..., None].astype(jnp.bfloat16)).reshape(S, n, K * 2 * H)

    # RPE attention bias (12 -> 1) precomputed here; fold the invalid-target mask in.
    bias = jnp.einsum("snkr,r->snk", rpe_enc.astype(jnp.float32), p["wrpe"][:, 0])
    bias = bias + (1.0 - tval) * (-1e9)
    sval = (~invalid).astype(jnp.float32)[..., None]                       # [S,n,1]

    # per-token f32 slab: [src(32) | q(32) | bias(4) | sval(1) | 0-pad] -> 128 lanes
    pad = jnp.zeros((S, n, SLAB - (2 * H + K + 1)), jnp.float32)
    slab = jnp.concatenate([embq, bias, sval, pad], axis=-1)               # [S,n,128]

    N = S * n
    tile, n_pad = _tiling(N)
    slab_f = _pad_rows(slab.reshape(N, SLAB), n_pad)
    kvg_f = _pad_rows(kv_g.reshape(N, K * 2 * H), n_pad)

    # coalesce the small f32 weight vectors into one (3,128) slab
    wvec = jnp.zeros((3, SLAB), jnp.float32)
    wvec = wvec.at[0, :4 * H].set(p["bf1"][0])
    wvec = wvec.at[1, 0:H].set(p["ln1g"][0]).at[1, H:2 * H].set(p["ln1b"][0])
    wvec = wvec.at[1, 2 * H:3 * H].set(p["ln2g"][0]).at[1, 3 * H:4 * H].set(p["ln2b"][0])
    wvec = wvec.at[2, 0:H].set(p["bf2"][0])

    args = (slab_f, kvg_f,
            p["wo"].astype(jnp.bfloat16), p["wf1"].astype(jnp.bfloat16),
            p["wf2"].astype(jnp.bfloat16), wvec)
    out = pl.pallas_call(
        _tf_block_kernel,
        out_shape=jax.ShapeDtypeStruct((n_pad, H), jnp.float32),
        grid=(n_pad // tile,),
        in_specs=[_row_spec((tile, SLAB)), _row_spec((tile, K * 2 * H)),
                  _rep_spec((H, H)), _rep_spec((H, 4 * H)),
                  _rep_spec((4 * H, H)), _rep_spec((3, SLAB))],
        out_specs=_row_spec((tile, H)),
        compiler_params=_PARALLEL,
    )(*args)
    return out[:N].reshape(S, n, H)


# ----------------------------------------------------------------------------
# JAX glue: pose RPE features and k-NN selection (no clean Pallas top-k path)
# ----------------------------------------------------------------------------
def pose_rpe(xy, dr):
    """xy: [..., 2], dr: [..., 1] -> [..., RPE_DIM] sinusoidal pose encoding."""
    feats = jnp.concatenate([xy, dr], axis=-1)                 # [..., 3]
    freqs = jnp.asarray([1.0, 0.5], jnp.float32)
    ang = feats[..., None] * freqs                             # [..., 3, 2]
    out = jnp.concatenate([jnp.sin(ang), jnp.cos(ang)], -1)    # [..., 3, 4]
    return out.reshape(*feats.shape[:-1], RPE_DIM)


def get_tgt_knn_idx(tgt_invalid, rel_pose, rel_dist, n_tgt_knn, dist_limit):
    """tgt_invalid: [S,n]; rel_pose: [S,n,n,3]; rel_dist: [S,n,n]; dist_limit: float or [S,n,1]."""
    # TODO(synk): top-k neighbor selection kept in plain JAX (no Pallas top-k primitive).
    masked = tgt_invalid[:, None, :] | (rel_dist > dist_limit)
    dist = jnp.where(masked, jnp.inf, rel_dist)
    neg_vals, idx = jax.lax.top_k(-dist, n_tgt_knn)            # k smallest distances
    invalid_knn = ~jnp.isfinite(-neg_vals)                     # [S, n, k]
    rpe_knn = jnp.take_along_axis(rel_pose, idx[..., None], axis=2)   # [S, n, k, 3]
    return idx, invalid_knn, rpe_knn


# ----------------------------------------------------------------------------
# one branch (map / tl / agent): fused MLP+qkv -> k-NN -> TransformerBlock layers
# ----------------------------------------------------------------------------
def _branch(attr, valid, fc_params, tf_params, rel_pose_s, rel_dist_s, dist_limit):
    # TODO(synk): the three branches are not batched into one pallas_call (different
    # attr dims / weights / token counts); each branch is its own pair of tiled kernels.
    # TODO(synk): full per-scene fusion of MLP -> neighbor gather -> attention into one
    # kernel (in-kernel gather) is left out; the gather stays in plain JAX.
    if tf_params:
        wqkv0 = _fused_qkv_weight(tf_params[0])
    else:
        wqkv0 = jnp.zeros((HIDDEN, 3 * HIDDEN), jnp.float32)
    embq, kv = mlp2_qkv(attr, valid, fc_params, wqkv0)
    emb = embq[..., :HIDDEN]
    invalid = ~valid
    if tf_params:
        idx, inv_knn, rpe_knn = get_tgt_knn_idx(
            invalid, rel_pose_s, rel_dist_s, N_TGT_KNN, dist_limit)
        rpe = pose_rpe(rpe_knn[..., :2], rpe_knn[..., 2:3])
        for li, p_tf in enumerate(tf_params):
            if li > 0:
                embq, kv = qkv_proj(emb, _fused_qkv_weight(p_tf))
            emb = tf_block(embq, kv, invalid, idx, inv_knn, rpe, p_tf)
    return emb, valid


# ----------------------------------------------------------------------------
# IntraClassEncoder.forward (pl_aggr=True path)
# ----------------------------------------------------------------------------
def intra_class_encoder_forward(params, inference_repeat_n, inference_cache_map,
                                agent_valid, agent_attr, map_valid, map_attr,
                                tl_valid, tl_attr, rel_pose, rel_dist,
                                dist_limit_map, dist_limit_tl, dist_limit_agent):
    # TODO(synk): PointNet branch (pl_aggr=False) not exercised; inference_repeat_n assumed 1.
    n_scene, n_tl, _ = tl_valid.shape
    n_map = map_valid.shape[1]
    n_agent = agent_valid.shape[1]

    # ---- map branch ----
    map_emb, map_valid_r = _branch(
        map_attr, map_valid, params["fc_map"], params["tf_map"],
        rel_pose[:, :n_map, :n_map], rel_dist[:, :n_map, :n_map], dist_limit_map)

    # ---- traffic-light branch ----
    tl_attr_s = jnp.squeeze(tl_attr, 2)
    tl_valid_s = jnp.squeeze(tl_valid, 2)
    tl_emb, _ = _branch(
        tl_attr_s, tl_valid_s, params["fc_tl"], params["tf_tl"],
        rel_pose[:, n_map:n_map + n_tl, n_map:n_map + n_tl],
        rel_dist[:, n_map:n_map + n_tl, n_map:n_map + n_tl], dist_limit_tl)

    # ---- agent branch ----
    agent_emb, agent_valid_r = _branch(
        agent_attr, agent_valid, params["fc_agent"], params["tf_agent"],
        rel_pose[:, -n_agent:, -n_agent:], rel_dist[:, -n_agent:, -n_agent:],
        dist_limit_agent)

    return map_emb, map_valid_r, tl_emb, tl_valid_s, agent_emb, agent_valid_r


# ----------------------------------------------------------------------------
if __name__ == "__main__":
    key = jax.random.PRNGKey(0)
    S, n_map, n_tl, n_agent = 2, 8, 4, 4
    map_attr_dim, tl_attr_dim, agent_attr_dim = 10, 6, 12
    M = n_map + n_tl + n_agent

    ks = jax.random.split(key, 6)
    map_attr = jax.random.normal(ks[0], (S, n_map, map_attr_dim), jnp.float32)
    agent_attr = jax.random.normal(ks[1], (S, n_agent, agent_attr_dim), jnp.float32)
    tl_attr = jax.random.normal(ks[2], (S, n_tl, 1, tl_attr_dim), jnp.float32)

    map_valid = jnp.ones((S, n_map), bool).at[:, -1].set(False)
    agent_valid = jnp.ones((S, n_agent), bool).at[0, -1].set(False)
    tl_valid = jnp.ones((S, n_tl, 1), bool)

    pos = jax.random.uniform(ks[3], (S, M, 2), jnp.float32, 0.0, 5.0)
    yaw = jax.random.uniform(ks[4], (S, M), jnp.float32, -np.pi, np.pi)
    dxy = pos[:, None, :, :] - pos[:, :, None, :]
    dyaw = yaw[:, None, :] - yaw[:, :, None]
    dyaw = (dyaw + np.pi) % (2.0 * np.pi) - np.pi                 # wrap heading to [-pi, pi)
    rel_pose = jnp.concatenate([dxy, dyaw[..., None]], axis=-1)   # [S, M, M, 3]
    rel_dist = jnp.linalg.norm(dxy, axis=-1)                      # [S, M, M]

    dist_limit_map = 10.0
    dist_limit_tl = 10.0
    dist_limit_agent = jnp.full((S, n_agent, 1), 10.0, jnp.float32)

    pkeys = jax.random.split(jax.random.PRNGKey(42), 6)
    params = {
        "fc_map": init_mlp(pkeys[0], map_attr_dim, HIDDEN),
        "fc_tl": init_mlp(pkeys[1], tl_attr_dim, HIDDEN),
        "fc_agent": init_mlp(pkeys[2], agent_attr_dim, HIDDEN),
        "tf_map": [init_tf(pkeys[3], HIDDEN, RPE_DIM)],
        "tf_tl": [init_tf(pkeys[4], HIDDEN, RPE_DIM)],
        "tf_agent": [init_tf(pkeys[5], HIDDEN, RPE_DIM)],
    }

    outs = intra_class_encoder_forward(
        params, 1, False,
        agent_valid, agent_attr, map_valid, map_attr,
        tl_valid, tl_attr, rel_pose, rel_dist,
        dist_limit_map, dist_limit_tl, dist_limit_agent)
    jax.block_until_ready(outs)
    assert outs[0].shape == (S, n_map, HIDDEN)
    assert outs[2].shape == (S, n_tl, HIDDEN)
    assert outs[4].shape == (S, n_agent, HIDDEN)
    assert all(bool(jnp.all(jnp.isfinite(o))) for o in (outs[0], outs[2], outs[4]))
    print("KERNEL_OK")
</pallas_src>

<mosaic_0001>
module attributes {stable_mosaic.version = 11 : i64} {
  func.func @_mlp2_qkv_kernel(%arg0: i32, %arg1: memref<16x11xf32, #tpu.memory_space<vmem>>, %arg2: memref<10x32xbf16, #tpu.memory_space<vmem>>, %arg3: memref<2x32xf32, #tpu.memory_space<vmem>>, %arg4: memref<32x32xbf16, #tpu.memory_space<vmem>>, %arg5: memref<32x96xbf16, #tpu.memory_space<vmem>>, %arg6: memref<16x64xf32, #tpu.memory_space<vmem>>, %arg7: memref<16x64xbf16, #tpu.memory_space<vmem>>) attributes {dimension_semantics = [#tpu.dimension_semantics<parallel>], iteration_bounds = array<i64: 1>, scalar_prefetch = 0 : i64, scratch_operands = 0 : i64, tpu.core_type = #tpu.core_type<tc>, window_params = [{transform_indices = @transform_0, window_bounds = array<i64: 16, 11>}, {pipeline_mode = #tpu.pipeline_mode<synchronous>, transform_indices = @transform_1, window_bounds = array<i64: 10, 32>}, {pipeline_mode = #tpu.pipeline_mode<synchronous>, transform_indices = @transform_2, window_bounds = array<i64: 2, 32>}, {pipeline_mode = #tpu.pipeline_mode<synchronous>, transform_indices = @transform_3, window_bounds = array<i64: 32, 32>}, {pipeline_mode = #tpu.pipeline_mode<synchronous>, transform_indices = @transform_4, window_bounds = array<i64: 32, 96>}, {transform_indices = @transform_5, window_bounds = array<i64: 16, 64>}, {transform_indices = @transform_6, window_bounds = array<i64: 16, 64>}]} {
    %c0 = arith.constant 0 : index
    %c0_0 = arith.constant 0 : index
    %0 = vector.load %arg1[%c0, %c0_0] : memref<16x11xf32, #tpu.memory_space<vmem>>, vector<16x11xf32>
    %1 = vector.extract_strided_slice %0 {offsets = [0, 0], sizes = [16, 10], strides = [1, 1]} : vector<16x11xf32> to vector<16x10xf32>
    %2 = arith.truncf %1 : vector<16x10xf32> to vector<16x10xbf16>
    %3 = vector.extract_strided_slice %0 {offsets = [0, 10], sizes = [16, 1], strides = [1, 1]} : vector<16x11xf32> to vector<16x1xf32>
    %c0_1 = arith.constant 0 : index
    %c0_2 = arith.constant 0 : index
    %4 = vector.load %arg3[%c0_1, %c0_2] : memref<2x32xf32, #tpu.memory_space<vmem>>, vector<1x32xf32>
    %c1 = arith.constant 1 : index
    %c0_3 = arith.constant 0 : index
    %5 = vector.load %arg3[%c1, %c0_3] : memref<2x32xf32, #tpu.memory_space<vmem>>, vector<1x32xf32>
    %c0_4 = arith.constant 0 : index
    %c0_5 = arith.constant 0 : index
    %6 = vector.load %arg2[%c0_4, %c0_5] : memref<10x32xbf16, #tpu.memory_space<vmem>>, vector<10x32xbf16>
    %cst = arith.constant dense<0.000000e+00> : vector<16x32xf32>
    %7 = tpu.matmul %2, %6, %cst {dimension_numbers = #tpu.dot_dimension_numbers<[1], [0], [0], [1], [0, 0, 1, 1], [], []>} : vector<16x10xbf16>, vector<10x32xbf16>, vector<16x32xf32> -> vector<16x32xf32>
    %8 = vector.broadcast %4 : vector<1x32xf32> to vector<16x32xf32>
    %9 = arith.addf %7, %8 : vector<16x32xf32>
    %cst_6 = arith.constant 0.000000e+00 : f32
    %10 = vector.broadcast %cst_6 : f32 to vector<16x32xf32>
    %11 = arith.maximumf %9, %10 : vector<16x32xf32>
    %12 = arith.truncf %11 : vector<16x32xf32> to vector<16x32xbf16>
    %c0_7 = arith.constant 0 : index
    %c0_8 = arith.constant 0 : index
    %13 = vector.load %arg4[%c0_7, %c0_8] : memref<32x32xbf16, #tpu.memory_space<vmem>>, vector<32x32xbf16>
    %cst_9 = arith.constant dense<0.000000e+00> : vector<16x32xf32>
    %14 = tpu.matmul %12, %13, %cst_9 {dimension_numbers = #tpu.dot_dimension_numbers<[1], [0], [0], [1], [0, 0, 1, 1], [], []>} : vector<16x32xbf16>, vector<32x32xbf16>, vector<16x32xf32> -> vector<16x32xf32>
    %15 = vector.broadcast %5 : vector<1x32xf32> to vector<16x32xf32>
    %16 = arith.addf %14, %15 : vector<16x32xf32>
    %cst_10 = arith.constant 0.000000e+00 : f32
    %17 = vector.broadcast %cst_10 : f32 to vector<16x32xf32>
    %18 = arith.maximumf %16, %17 : vector<16x32xf32>
    %19 = vector.broadcast %3 : vector<16x1xf32> to vector<16x32xf32>
    %20 = arith.mulf %18, %19 : vector<16x32xf32>
    %21 = arith.truncf %20 : vector<16x32xf32> to vector<16x32xbf16>
    %c0_11 = arith.constant 0 : index
    %c0_12 = arith.constant 0 : index
    %22 = vector.load %arg5[%c0_11, %c0_12] : memref<32x96xbf16, #tpu.memory_space<vmem>>, vector<32x96xbf16>
    %cst_13 = arith.constant dense<0.000000e+00> : vector<16x96xf32>
    %23 = tpu.matmul %21, %22, %cst_13 {dimension_numbers = #tpu.dot_dimension_numbers<[1], [0], [0], [1], [0, 0, 1, 1], [], []>} : vector<16x32xbf16>, vector<32x96xbf16>, vector<16x96xf32> -> vector<16x96xf32>
    %24 = vector.extract_strided_slice %23 {offsets = [0, 0], sizes = [16, 32], strides = [1, 1]} : vector<16x96xf32> to vector<16x32xf32>
    %25 = tpu.concatenate %20, %24 in 1 : vector<16x32xf32>, vector<16x32xf32> -> vector<16x64xf32>
    %c0_14 = arith.constant 0 : index
    %c0_15 = arith.constant 0 : index
    %26 = vector.load %arg6[%c0_14, %c0_15] : memref<16x64xf32, #tpu.memory_space<vmem>>, vector<16x64xf32>
    tpu.vector_store %arg6[%c0_14, %c0_15], %25 {strides = array<i32>} : memref<16x64xf32, #tpu.memory_space<vmem>>, vector<16x64xf32>,
    %27 = vector.extract_strided_slice %23 {offsets = [0, 32], sizes = [16, 64], strides = [1, 1]} : vector<16x96xf32> to vector<16x64xf32>
    %28 = arith.truncf %27 : vector<16x64xf32> to vector<16x64xbf16>
    %c0_16 = arith.constant 0 : index
    %c0_17 = arith.constant 0 : index
    %29 = vector.load %arg7[%c0_16, %c0_17] : memref<16x64xbf16, #tpu.memory_space<vmem>>, vector<16x64xbf16>
    tpu.vector_store %arg7[%c0_16, %c0_17], %28 {strides = array<i32>} : memref<16x64xbf16, #tpu.memory_space<vmem>>, vector<16x64xbf16>,
    return
  }
  func.func @transform_0(%arg0: i32) -> (i32, i32) {
    %c0_i32 = arith.constant 0 : i32
    %c0_i32_0 = arith.constant 0 : i32
    return %arg0, %c0_i32 : i32, i32
  }
  func.func @transform_1(%arg0: i32) -> (i32, i32) {
    %c0_i32 = arith.constant 0 : i32
    %c0_i32_0 = arith.constant 0 : i32
    %c0_i32_1 = arith.constant 0 : i32
    return %c0_i32, %c0_i32_0 : i32, i32
  }
  func.func @transform_2(%arg0: i32) -> (i32, i32) {
    %c0_i32 = arith.constant 0 : i32
    %c0_i32_0 = arith.constant 0 : i32
    %c0_i32_1 = arith.constant 0 : i32
    return %c0_i32, %c0_i32_0 : i32, i32
  }
  func.func @transform_3(%arg0: i32) -> (i32, i32) {
    %c0_i32 = arith.constant 0 : i32
    %c0_i32_0 = arith.constant 0 : i32
    %c0_i32_1 = arith.constant 0 : i32
    return %c0_i32, %c0_i32_0 : i32, i32
  }
  func.func @transform_4(%arg0: i32) -> (i32, i32) {
    %c0_i32 = arith.constant 0 : i32
    %c0_i32_0 = arith.constant 0 : i32
    %c0_i32_1 = arith.constant 0 : i32
    return %c0_i32, %c0_i32_0 : i32, i32
  }
  func.func @transform_5(%arg0: i32) -> (i32, i32) {
    %c0_i32 = arith.constant 0 : i32
    %c0_i32_0 = arith.constant 0 : i32
    return %arg0, %c0_i32 : i32, i32
  }
  func.func @transform_6(%arg0: i32) -> (i32, i32) {
    %c0_i32 = arith.constant 0 : i32
    %c0_i32_0 = arith.constant 0 : i32
    return %arg0, %c0_i32 : i32, i32
  }
}

</mosaic_0001>

<bundles_post_ra>
// kernel: tpu_custom_call.1
= control target key start
LH: loop header
LB: loop body
LE: loop exit
PB: predicated region body
PF: predicated region fallthrough
CT: control target
= control target key end

     0   :  { %12 = vsyncpa [#allocation3], 0  ;;  %s644_s0 = inlined_call_operand.hbm [shape: f32[16,11], index: 0, kind: input, shape index: {}]   ;;  %s645_s1 = inlined_call_operand.hbm [shape: bf16[10,32], index: 1, kind: input, shape index: {}]   ;;  %s646_s2 = inlined_call_operand.vmem [shape: f32[2,32], index: 2, kind: input, shape index: {}]   ;;  %s647_s3 = inlined_call_operand.hbm [shape: bf16[32,32], index: 3, kind: input, shape index: {}]   ;;  %s648_s4 = inlined_call_operand.hbm [shape: bf16[32,96], index: 4, kind: input, shape index: {}]   ;;  %s649_s5 = inlined_call_operand.hbm [shape: f32[16,64], index: 5, kind: output, shape index: {0}]   ;;  %s650_s6 = inlined_call_operand.hbm [shape: bf16[16,64], index: 6, kind: output, shape index: {1}]  }
   0x1   :  { %13 = vsyncpa [#allocation6], 0 }
   0x2   :  { %14 = vsyncpa [#allocation9], 0 }
   0x3   :  { %15 = vsyncpa [#allocation4], 0 }
   0x4   :  { %16 = vsyncpa [#allocation12], 0  ;;  %s546_s21 = smov [#allocation5]  }
   0x5   :  { %s34_s22 = sshll.u32 %s546_s21, 4  ;;  %s35_s22 = int_to_ptr.vmem [resolvable:$true] %s34_s22 }
   0x6   :  { %s424_s23 = scalar_lea.vmem %s35_s22, 128  ;;  %p429_p1 = scmp.lt.s32.totalorder %s35_s22, %s35_s22 }
   0x7   :  { %p425_p0 = scmp.ne.s32.totalorder %s35_s22, %s424_s23  ;;  %p430_p2 = scmp.lt.s32.totalorder %s424_s23, %s424_s23 }
   0x9   :  { %p431_p3 = por %p430_p2, %p429_p1 }
   0xb   :  { %p432_p4 = pnand %p431_p3, %p425_p0 }
   0xd   :  { %435 = shalt.err (!%p432_p4)
}
   0xe   :  { %s547_s24 = smov 64   ;;  %s548_s25 = smov 4  }
   0xf   :  { %40 = dma.hbm_to_vmem [thread:$0]  %s645_s1, 128, %s35_s22, [#allocation6], %s547_s24, %s547_s24, %s548_s25  }
  0x10   :  { %s549_s28 = smov [#allocation2]  }
  0x11   :  { %s22_s29 = sshll.u32 %s549_s28, 4  ;;  %s23_s29 = int_to_ptr.vmem [resolvable:$true] %s22_s29 }
  0x12   :  { %s444_s30 = scalar_lea.vmem %s23_s29, 256  ;;  %p449_p6 = scmp.lt.s32.totalorder %s23_s29, %s23_s29 }
  0x13   :  { %p445_p5 = scmp.ne.s32.totalorder %s23_s29, %s444_s30  ;;  %p450_p7 = scmp.lt.s32.totalorder %s444_s30, %s444_s30 }
  0x15   :  { %p451_p8 = por %p450_p7, %p449_p6 }
  0x17   :  { %p452_p9 = pnand %p451_p8, %p445_p5 }
  0x19   :  { %455 = shalt.err (!%p452_p9)
}
  0x1a   :  { %s550_s7 = smov 128   ;;  %s551_s8 = smov 8  }
  0x1b   :  { %28 = dma.hbm_to_vmem [thread:$0]  %s644_s0, 256, %s23_s29, [#allocation3], %s550_s7, %s550_s7, %s551_s8  }
  0x1c   :  { %s552_s1 = smov [#allocation7]   ;;  %s553_s12 = smov [#allocation8]  }
  0x1d   :  { %s48_s11 = sshll.u32 %s552_s1, 4  ;;  %s60_s13 = sshll.u32 %s553_s12, 4  ;;  %s49_s11 = int_to_ptr.vmem [resolvable:$true] %s48_s11  ;;  %s61_s13 = int_to_ptr.vmem [resolvable:$true] %s60_s13 }
  0x1e   :  { %s464_s14 = scalar_lea.vmem %s49_s11, 256  ;;  %p469_p11 = scmp.lt.s32.totalorder %s49_s11, %s49_s11 }
  0x1f   :  { %p465_p10 = scmp.ne.s32.totalorder %s49_s11, %s464_s14  ;;  %p470_p12 = scmp.lt.s32.totalorder %s464_s14, %s464_s14 }
  0x21   :  { %p471_p13 = por %p470_p12, %p469_p11 }
  0x23   :  { %p472_p0 = pnand %p471_p13, %p465_p10 }
  0x25   :  { %475 = shalt.err (!%p472_p0)
}
  0x26   :  { %54 = dma.hbm_to_vmem [thread:$0]  %s647_s3, 256, %s49_s11, [#allocation6], %s547_s24, %s547_s24, %s548_s25  }
  0x27   :  { %s484_s0 = scalar_lea.vmem %s61_s13, 256  ;;  %p489_p2 = scmp.lt.s32.totalorder %s61_s13, %s61_s13 }
  0x28   :  { %p485_p1 = scmp.ne.s32.totalorder %s61_s13, %s484_s0  ;;  %p490_p3 = scmp.lt.s32.totalorder %s484_s0, %s484_s0 }
  0x2a   :  { %p491_p4 = por %p490_p3, %p489_p2 }
  0x2c   :  { %p492_p5 = pnand %p491_p4, %p485_p1 }
  0x2e   :  { %495 = shalt.err (!%p492_p5)
}
  0x2f   :  { %66 = dma.hbm_to_vmem [thread:$0]  %s648_s4, 256, %s61_s13, [#allocation9], %s547_s24, %s547_s24, %s548_s25  }
  0x30   :  { %536 = dma.done.wait [#allocation3], 256  }
  0x31   :  { %537 = vsyncadd [#allocation3], 4294967040 }
  0x32   :  { %538 = dma.done.wait [#allocation6], 384  }
  0x33   :  { %539 = vsyncadd [#allocation6], 4294966912 }
  0x34   :  { %540 = dma.done.wait [#allocation9], 256  }
  0x35   :  { %541 = vsyncadd [#allocation9], 4294967040  ;;  %v554_v0 = vmov 0.0   ;;  %vm555_vm0 = vmmov 0   ;;  %vm100_vm1 = vcmask 1044480   ;;  %v80_v2 = vld [vmem:[#allocation2] sm:$0xff] }
  0x36   :  { %373 = vmatprep.subr.bf16.mxu0 %v554_v0  ;;  %375 = vmatprep.mubr.msk.bf16.mxu0 %vm555_vm0, %v554_v0  ;;  %v411_v1 = vld [vmem:[#allocation5] sm:$0x1f]   ;;  %v81_v3 = vld [vmem:[#allocation2 + $0x8] sm:$0xff]  ;;  %vm96_vm2 = vcmask 80896   ;;  %v412_v6 = vld [vmem:[#allocation7 + $0x8] sm:$0xff]   ;;  %v556_v8 = vmov 10  }
  0x37   :  { %379 = vmatprep.subr.bf16.mxu1 %v554_v0  ;;  %383 = vmatprep.mubr.msk.bf16.mxu1 %vm555_vm0, %v554_v0  ;;  %v102_v4 = vsel %vm100_vm1, %v411_v1, 0  ;;  %v82_v5 = vpack.c.bf16 %v81_v3, %v80_v2  ;;  %v413_v7 = vld [vmem:[#allocation7] sm:$0xff]   ;;  %v351_v9 = vld [vmem:[%s646_s2] ss:$0 sm:$0xff]  ;;  %vm168_vm3 = vcmask 261120   ;;  %v414_v19 = vld [vmem:[#allocation8 + $0x8] sm:$0xff]  }
  0x38   :  { %374 = vmatpush3.bf16.msra.mxu0 %v102_v4  ;;  %380 = vmatpush3.bf16.msra.mxu1 %v412_v6  ;;  %v415_v20 = vld [vmem:[#allocation8] sm:$0xff]   ;;  %v354_v21 = vld [vmem:[%s646_s2 + $0x1] ss:$0 sm:$0xff]  ;;  %s557_s21 = smov 32   ;;  %s558_s2 = smov 96   ;;  %vm298_vm4 = vcmask 523264  }
  0x39   :  { %387 = vmatprep.subr.bf16.mxu0 %v554_v0  ;;  %381 = vmatprep.subr.bf16.mxu1 %v554_v0  ;;  %vm313_vm5 = vcmask 519168   ;;  %s559_s22 = smov [#allocation10]   ;;  %s560_s26 = smov [#allocation11]  }
  0x3a   :  { %410 = vset.pattern.permute.xlu0 %v556_v8  ;;  %s321_s23 = sshll.u32 %s559_s22, 4  ;;  %s333_s27 = sshll.u32 %s560_s26, 4  ;;  %s322_s23 = int_to_ptr.vmem [resolvable:$true] %s321_s23  ;;  %s334_s27 = int_to_ptr.vmem [resolvable:$true] %s333_s27 }
  0x3b   :  { %376 = vmatmul.mubr.msk.bf16.vlgmr.msra.gmra.mxu0 %vm96_vm2, %v82_v5  ;;  %217 = vperm.xlu0 %410, %v80_v2   ;;  %s496_s28 = scalar_lea.vmem %s322_s23, 256  ;;  %p501_p7 = scmp.lt.s32.totalorder %s322_s23, %s322_s23 }
  0x3c   :  { %391 = vmatprep.mubr.msk.bf16.mxu0 %vm555_vm0, %v554_v0  ;;  %382 = vmatpush3.bf16.msra.mxu1 %v413_v7  ;;  %p497_p6 = scmp.ne.s32.totalorder %s322_s23, %s496_s28  ;;  %p502_p8 = scmp.lt.s32.totalorder %s496_s28, %s496_s28 }
  0x3d   :  { %388 = vmatpush3.bf16.msra.mxu0 %v414_v19 }
  0x3e   :  { %389 = vmatprep.subr.bf16.mxu0 %v554_v0  ;;  %p503_p9 = por %p502_p8, %p501_p7 }
  0x3f   :  { %222 = vperm.xlu0 %410, %v81_v3  }
  0x40   :  { %p504_p10 = pnand %p503_p9, %p497_p6 }
  0x41   :  { %390 = vmatpush3.bf16.msra.mxu0 %v415_v20 }
  0xb6   :  { %v218_v24 = vpop.permute.xlu0 %217 }
  0xba   :  { %v223_v31 = vpop.permute.xlu0 %222 }
  0xfb   :  { %v138_v10 = vpop.f32.mrf.mxu0 }
  0xfc   :  { %v139_v12 = vadd.f32 %v351_v9, %v138_v10 }
  0xfd   :  { %v377_v11 = vpop.f32.mrf.mxu0 }
  0xfe   :  { %v145_v16 = vmax.f32 %v139_v12, 0.0 }
  0xff   :  { %v141_v13 = vpop.f32.mrf.mxu0 }
 0x100   :  { %v142_v14 = vadd.f32 %v351_v9, %v141_v13 }
 0x101   :  { %v378_v15 = vpop.f32.mrf.mxu0 }
 0x102   :  { %v146_v17 = vmax.f32 %v142_v14, 0.0 }
 0x104   :  { %v147_v18 = vpack.c.bf16 %v146_v17, %v145_v16 }
 0x106   :  { %384 = vmatmul.mubr.msk.bf16.vlgmr.msra.gmra.mxu1 %vm168_vm3, %v147_v18 }
 0x1c6   :  { %v206_v22 = vpop.f32.mrf.mxu1 }
 0x1c7   :  { %v207_v23 = vadd.f32 %v354_v21, %v206_v22 }
 0x1c8   :  { %v385_v25 = vpop.f32.mrf.mxu1 }
 0x1c9   :  { %v213_v27 = vmax.f32 %v207_v23, 0.0 }
 0x1ca   :  { %v209_v26 = vpop.f32.mrf.mxu1 }
 0x1cb   :  { %v210_v28 = vadd.f32 %v354_v21, %v209_v26  ;;  %v225_v32 = vmul.f32 %v218_v24, %v213_v27 }
 0x1cc   :  { %v386_v29 = vpop.f32.mrf.mxu1 }
 0x1cd   :  { %v214_v30 = vmax.f32 %v210_v28, 0.0 }
 0x1cf   :  { %v226_v33 = vmul.f32 %v223_v31, %v214_v30 }
 0x1d1   :  { %v227_v34 = vpack.c.bf16 %v226_v33, %v225_v32 }
 0x1d3   :  { %392 = vmatmul.mubr.msk.bf16.vlgmr.msra.gmra.mxu0 %vm168_vm3, %v227_v34 }
 0x293   :  { %v281_v35 = vpop.f32.mrf.mxu0 }
 0x294   :  { %v363_v36 = vpack.c.bf16 %v281_v35, %v281_v35  ;;  %290 = vrot.lane.b32.xlu1 %v281_v35, %s557_s21 }
 0x295   :  { %v393_v37 = vpop.f32.mrf.mxu0 }
 0x296   :  { %307 = vrot.lane.b32.xlu0 %v363_v36, %s558_s2 }
 0x297   :  { %v284_v38 = vpop.f32.mrf.mxu0 }
 0x298   :  { %292 = vrot.lane.b32.xlu1 %v284_v38, %s557_s21  ;;  %v364_v40 = vpack.c.bf16 %v284_v38, %v284_v38 }
 0x299   :  { %v394_v39 = vpop.f32.mrf.mxu0 }
 0x29c   :  { %309 = vrot.lane.b32.xlu1 %v364_v40, %s558_s2 }
 0x306   :  { %v291_v41 = vpop.permute.xlu1 %290 }
 0x307   :  { %v296_v42 = vsel %vm168_vm3, %v225_v32, %v291_v41 }
 0x308   :  { %v308_v43 = vpop.permute.xlu0 %307  ;;  %299 = vst.msk [vmem:[#allocation10] sm:$0xff] %vm298_vm4, %v296_v42 }
 0x309   :  { %314 = vst.msk [vmem:[#allocation11] sm:$0xf] %vm313_vm5, %v308_v43 }
 0x30a   :  { %v293_v44 = vpop.permute.xlu1 %292 }
 0x30b   :  { %v297_v45 = vsel %vm168_vm3, %v226_v33, %v293_v44 }
 0x30c   :  { %300 = vst.msk [vmem:[#allocation10 + $0x8] sm:$0xff] %vm298_vm4, %v297_v45 }
 0x30d   :  { %507 = shalt.err (!%p504_p10)
}
 0x30e   :  { %327 = dma.vmem_to_hbm [thread:$0]  %s322_s23, 256, %s649_s5, [#allocation4], %s550_s7, %s550_s7, %s551_s8   ;;  %v310_v46 = vpop.permute.xlu1 %309 }
 0x30f   :  { %315 = vst.msk [vmem:[#allocation11 + $0x4] sm:$0xf] %vm313_vm5, %v310_v46  ;;  %s516_s9 = scalar_lea.vmem %s334_s27, 128  ;;  %p521_p12 = scmp.lt.s32.totalorder %s334_s27, %s334_s27 }
 0x310   :  { %p517_p11 = scmp.ne.s32.totalorder %s334_s27, %s516_s9  ;;  %p522_p13 = scmp.lt.s32.totalorder %s516_s9, %s516_s9 }
 0x312   :  { %p523_p0 = por %p522_p13, %p521_p12 }
 0x314   :  { %p524_p1 = pnand %p523_p0, %p517_p11 }
 0x316   :  { %527 = shalt.err (!%p524_p1)
}
 0x317   :  { %339 = dma.vmem_to_hbm [thread:$0]  %s334_s27, 128, %s650_s6, [#allocation12], %s547_s24, %s547_s24, %s548_s25  }
 0x318   :  { %542 = dma.done.wait [#allocation4], 256  }
 0x319   :  { %543 = vsyncadd [#allocation4], 4294967040 }
 0x31a   :  { %544 = dma.done.wait [#allocation12], 128  }
 0x31b   :  { %545 = vsyncadd [#allocation12], 4294967168 }
 0x31c   :  { %346 = vsyncpa [#allocation3], 1 }
 0x31d   :  { %347 = vsyncpa [#allocation6], 1 }
 0x31e   :  { %348 = vsyncpa [#allocation9], 1 }
 0x31f   :  { %349 = vsyncpa [#allocation4], 1 }
 0x320   :  { %350 = vsyncpa [#allocation12], 1 }

</bundles_post_ra>
